<compile_context>
chip_gen: v7x
topology: tpu7x:2x2x1
jax: 0.10.0
libtpu: 0.0.40
codegen_flags: <defaults>
</compile_context>

<pallas_src>
import functools

import jax
import jax.numpy as jnp
from jax.experimental import pallas as pl
from jax.experimental.pallas import tpu as pltpu


def _round_up(x, m):
    return ((x + m - 1) // m) * m


# -----------------------------------------------------------------------------
# Kernels
# -----------------------------------------------------------------------------
def _small_linear_kernel(x_ref, w_ref, b_ref, o_ref, *, cast_bf16):
    # Single-block path: whole (B,K)/(K,N) arrays live in VMEM.
    xv = x_ref[...]
    wv = w_ref[...]
    if cast_bf16:
        xv = xv.astype(jnp.bfloat16)
        wv = wv.astype(jnp.bfloat16)
    o_ref[...] = (
        jnp.dot(xv, wv, preferred_element_type=jnp.float32) + b_ref[...]
    ).astype(o_ref.dtype)


def _tiled_linear_kernel(x_ref, w_ref, b_ref, o_ref, *, cast_bf16):
    # Grid = (M tiles, N tiles, K tiles); K is innermost + "arbitrary", so the
    # f32 output block stays resident and we accumulate directly into it.
    k = pl.program_id(2)

    @pl.when(k == 0)
    def _init():
        o_ref[...] = jnp.zeros_like(o_ref)

    xv = x_ref[...]
    wv = w_ref[...]
    if cast_bf16:
        xv = xv.astype(jnp.bfloat16)
        wv = wv.astype(jnp.bfloat16)
    o_ref[...] += jnp.dot(xv, wv, preferred_element_type=jnp.float32)

    @pl.when(k == pl.num_programs(2) - 1)
    def _finalize():
        # Bias added exactly once, after the last K step.
        o_ref[...] += b_ref[...]


# -----------------------------------------------------------------------------
# Wrapper (padding / tiling hoisted to init)
# -----------------------------------------------------------------------------
def make_acme_forward(weight, bias, *, use_bf16=False):
    """Build a forward fn for AcmeModel's (assumed) linear head.

    weight: (num_classes, input_size), bias: (num_classes,)  -- PyTorch layout.
    """
    num_classes, input_size = weight.shape
    N, K = int(num_classes), int(input_size)
    weight = jnp.asarray(weight, jnp.float32)
    bias = jnp.asarray(bias, jnp.float32)
    weight_t = jnp.asarray(weight.T)            # (K, N)
    bias_2d = bias.reshape(1, N)

    # Per-generation sizing: v5e/v6e have 128 MiB VMEM, v7x only 64 MiB.
    try:
        vmem_bytes = pltpu.get_tpu_info().vmem_capacity_bytes
    except Exception:
        vmem_bytes = 64 * 1024 * 1024
    big_vmem = vmem_bytes >= 100 * 1024 * 1024
    k_target = 2048 if big_vmem else 1024       # f32 K-tile target
    vmem_limit = (64 if big_vmem else 32) * 1024 * 1024

    # ---- N / K tiling (independent of batch; decided once) ------------------
    Np0 = _round_up(N, 128)
    nN = pl.cdiv(Np0, 512)
    tn = _round_up(pl.cdiv(Np0, nN), 128)
    if nN == 1 and tn > 128:
        # v7x megacore: guarantee >= 2 parallel tiles.  Splitting N (not M)
        # keeps the weight matrix streamed from HBM exactly once.
        tn = tn // 2 if tn % 256 == 0 else 128
        nN = Np0 // tn
    Np = tn * nN

    Kp0 = _round_up(K, 128)
    nK = pl.cdiv(Kp0, k_target)
    tk = _round_up(pl.cdiv(Kp0, nK), 128)
    Kp = tk * nK

    # Pre-padded parameters (done once, not per call).
    w_pad = jnp.pad(weight_t, ((0, Kp - K), (0, Np - N)))
    b_pad = jnp.pad(bias_2d, ((0, 0), (0, Np - N)))

    small_kernel = functools.partial(_small_linear_kernel, cast_bf16=use_bf16)
    tiled_kernel = functools.partial(_tiled_linear_kernel, cast_bf16=use_bf16)
    vmem_spec = pl.BlockSpec(memory_space=pltpu.MemorySpace.VMEM)

    # Deeper buffering on the weight stream when there are enough K steps
    # (hides weight DMA latency; most useful on v5e's ~820 GB/s HBM).
    if nK >= 3:
        w_spec = pl.BlockSpec(
            (tk, tn), lambda i, j, k: (k, j), pipeline_mode=pl.Buffered(3)
        )
    else:
        w_spec = pl.BlockSpec((tk, tn), lambda i, j, k: (k, j))

    def forward(x):
        x = jnp.asarray(x, jnp.float32)
        B = x.shape[0]
        assert x.shape == (B, K)

        # ---- tiny-shape fast path: one full-array block, zero padding ------
        if (B <= 128 and K <= 1024 and N <= 1024
                and 4 * (B * K + K * N + B * N + N) <= 4 * 1024 * 1024):
            return pl.pallas_call(
                small_kernel,
                out_shape=jax.ShapeDtypeStruct((B, N), jnp.float32),
                in_specs=[vmem_spec, vmem_spec, vmem_spec],
                out_specs=vmem_spec,
            )(x, weight_t, bias_2d)

        # ---- tiled path -----------------------------------------------------
        # tm covers the whole (padded) batch when it fits, so the weight
        # matrix is read from HBM only once.
        Mp0 = _round_up(B, 8)
        nM = pl.cdiv(Mp0, 512)
        tm = _round_up(pl.cdiv(Mp0, nM), 8)
        if nM == 1 and nN == 1 and tm >= 16:
            # Last-resort megacore split (only when N could not be split).
            nM = 2
            tm = _round_up(pl.cdiv(tm, 2), 8)
        Mp = tm * nM

        xp = x if (Mp == B and Kp == K) else jnp.pad(
            x, ((0, Mp - B), (0, Kp - K)))

        cost = pl.CostEstimate(
            flops=2 * Mp * Np * Kp,
            transcendentals=0,
            bytes_accessed=4 * (Mp * Kp * nN + Kp * Np * nM + Np + Mp * Np),
        )

        out_p = pl.pallas_call(
            tiled_kernel,
            out_shape=jax.ShapeDtypeStruct((Mp, Np), jnp.float32),
            grid=(nM, nN, nK),
            in_specs=[
                pl.BlockSpec((tm, tk), lambda i, j, k: (i, k)),
                w_spec,
                pl.BlockSpec((1, tn), lambda i, j, k: (0, j)),
            ],
            # K must stay the last, "arbitrary" axis for the o_ref accumulate.
            out_specs=pl.BlockSpec((tm, tn), lambda i, j, k: (i, j)),
            compiler_params=pltpu.CompilerParams(
                dimension_semantics=("parallel", "parallel", "arbitrary"),
                vmem_limit_bytes=vmem_limit,
            ),
            cost_estimate=cost,
        )(xp, w_pad, b_pad)

        return out_p[:B, :N]

    return forward


def _ref_forward(x, weight, bias):
    return jnp.dot(x, weight.T, precision=jax.lax.Precision.HIGHEST) + bias[None, :]


if __name__ == "__main__":
    key = jax.random.PRNGKey(0)

    # --- 1) Small shapes consistent with AcmeModel(input_size=32, num_classes=16)
    #        batch=8 -> exercises the single-block fast path (no padding). ---
    batch, input_size, num_classes = 8, 32, 16
    ka, kb, kc, key = jax.random.split(key, 4)
    x1 = jax.random.normal(ka, (batch, input_size), jnp.float32)
    bound = 1.0 / (input_size ** 0.5)
    w1 = jax.random.uniform(kb, (num_classes, input_size), jnp.float32, -bound, bound)
    b1 = jax.random.uniform(kc, (num_classes,), jnp.float32, -bound, bound)

    fwd1 = make_acme_forward(w1, b1)
    out1 = jax.block_until_ready(fwd1(x1))
    assert out1.shape == (batch, num_classes)
    assert jnp.allclose(out1, _ref_forward(x1, w1, b1), atol=1e-5, rtol=1e-5)

    # --- 2) Mid-size shapes -> tiled path with M/K/N padding, single K step. ---
    b2, k2, n2 = 200, 384, 192
    ka, kb, kc, key = jax.random.split(key, 4)
    x2 = jax.random.normal(ka, (b2, k2), jnp.float32)
    w2 = jax.random.normal(kb, (n2, k2), jnp.float32) * 0.02
    bi2 = jax.random.normal(kc, (n2,), jnp.float32) * 0.02
    fwd2 = make_acme_forward(w2, bi2)
    out2 = jax.block_until_ready(fwd2(x2))
    assert out2.shape == (b2, n2)
    assert jnp.allclose(out2, _ref_forward(x2, w2, bi2), atol=1e-4, rtol=1e-4)

    # --- 3) Large K -> multi-step K reduction (exercises Buffered weight
    #        stream + multi-tile N for megacore). ---
    b3, k3, n3 = 264, 6400, 512
    ka, kb, kc, key = jax.random.split(key, 4)
    x3 = jax.random.normal(ka, (b3, k3), jnp.float32)
    w3 = jax.random.normal(kb, (n3, k3), jnp.float32) * 0.02
    bi3 = jax.random.normal(kc, (n3,), jnp.float32) * 0.02
    ref3 = _ref_forward(x3, w3, bi3)

    fwd3 = make_acme_forward(w3, bi3)
    out3 = jax.block_until_ready(fwd3(x3))
    assert out3.shape == (b3, n3)
    assert jnp.allclose(out3, ref3, atol=5e-3, rtol=5e-3)

    # bf16-compute variant (f32 accumulate), loose tolerance.
    fwd3_bf16 = make_acme_forward(w3, bi3, use_bf16=True)
    out3_bf = jax.block_until_ready(fwd3_bf16(x3))
    assert jnp.allclose(out3_bf, ref3, atol=6e-2, rtol=6e-2)

    print("KERNEL_OK")
</pallas_src>

<mosaic_0001>
module attributes {stable_mosaic.version = 11 : i64} {
  func.func @_small_linear_kernel(%arg0: memref<8x32xf32, #tpu.memory_space<vmem>>, %arg1: memref<32x16xf32, #tpu.memory_space<vmem>>, %arg2: memref<1x16xf32, #tpu.memory_space<vmem>>, %arg3: memref<8x16xf32, #tpu.memory_space<vmem>>) attributes {dimension_semantics = [], scalar_prefetch = 0 : i64, scratch_operands = 0 : i64, tpu.core_type = #tpu.core_type<tc>} {
    %c0 = arith.constant 0 : index
    %c0_0 = arith.constant 0 : index
    %0 = vector.load %arg0[%c0, %c0_0] : memref<8x32xf32, #tpu.memory_space<vmem>>, vector<8x32xf32>
    %c0_1 = arith.constant 0 : index
    %c0_2 = arith.constant 0 : index
    %1 = vector.load %arg1[%c0_1, %c0_2] : memref<32x16xf32, #tpu.memory_space<vmem>>, vector<32x16xf32>
    %cst = arith.constant dense<0.000000e+00> : vector<8x16xf32>
    %2 = tpu.matmul %0, %1, %cst {dimension_numbers = #tpu.dot_dimension_numbers<[1], [0], [0], [1], [0, 0, 1, 1], [], []>} : vector<8x32xf32>, vector<32x16xf32>, vector<8x16xf32> -> vector<8x16xf32>
    %c0_3 = arith.constant 0 : index
    %c0_4 = arith.constant 0 : index
    %3 = vector.load %arg2[%c0_3, %c0_4] : memref<1x16xf32, #tpu.memory_space<vmem>>, vector<1x16xf32>
    %4 = vector.broadcast %3 : vector<1x16xf32> to vector<8x16xf32>
    %5 = arith.addf %2, %4 : vector<8x16xf32>
    %c0_5 = arith.constant 0 : index
    %c0_6 = arith.constant 0 : index
    %6 = vector.load %arg3[%c0_5, %c0_6] : memref<8x16xf32, #tpu.memory_space<vmem>>, vector<8x16xf32>
    tpu.vector_store %arg3[%c0_5, %c0_6], %5 {strides = array<i32>} : memref<8x16xf32, #tpu.memory_space<vmem>>, vector<8x16xf32>,
    return
  }
}

</mosaic_0001>

<bundles_post_ra>
// kernel: tpu_custom_call.1
= control target key start
LH: loop header
LB: loop body
LE: loop exit
PB: predicated region body
PF: predicated region fallthrough
CT: control target
= control target key end

     0   :  { %v169_v3 = vmov 0.0|0.0   ;;  %vm170_vm0 = vmmov 0   ;;  %v171_v6 = vmov 0.0   ;;  %s223_s0 = inlined_call_operand.vmem [shape: f32[8,32], index: 0, kind: input, shape index: {}]   ;;  %s224_s1 = inlined_call_operand.vmem [shape: f32[32,16], index: 1, kind: input, shape index: {}]   ;;  %s225_s2 = inlined_call_operand.vmem [shape: f32[1,16], index: 2, kind: input, shape index: {}]   ;;  %s226_s3 = inlined_call_operand.hbm [shape: f32[8,16], index: 3, kind: output, shape index: {}]  }
   0x1   :  { %v16_v0 = vld [vmem:[%s224_s1] sm:$0xff]  ;;  %v17_v1 = vld [vmem:[%s224_s1 + $0x8] sm:$0xff]  ;;  %v18_v2 = vld [vmem:[%s224_s1 + $0x10] sm:$0xff]  ;;  %135 = vmatprep.subr.bf16.mxu0 %v169_v3  ;;  %132 = vmatprep.mubr.msk.f32.mxu0 %vm170_vm0, %v171_v6 }
   0x2   :  { %v136_v4 = vpack.c.bf16 %v17_v1, %v16_v0  ;;  %v19_v5 = vld [vmem:[%s224_s1 + $0x18] sm:$0xff] }
   0x3   :  { %8 = vsyncpa [#allocation3], 0  ;;  %v139_v7 = vpack.c.bf16 %v19_v5, %v18_v2  ;;  %v15_v8 = vld [vmem:[%s223_s0] sm:$0xff]  ;;  %vm27_vm1 = vcmask 261120   ;;  %s172_s24 = smov [#allocation2]   ;;  %vm101_vm2 = vcmask 130048  }
   0x4   :  { %137 = vmatpush3.bf16.msra.mxu0 %v136_v4  ;;  %v117_v9 = vld [vmem:[%s225_s2] ss:$0 sm:$0xff]  ;;  %s109_s1 = sshll.u32 %s172_s24, 4  ;;  %s110_s1 = int_to_ptr.vmem [resolvable:$true] %s109_s1 }
   0x5   :  { %138 = vmatprep.subr.bf16.mxu0 %v169_v3  ;;  %s145_s25 = scalar_lea.vmem %s110_s1, 128  ;;  %p150_p1 = scmp.lt.s32.totalorder %s110_s1, %s110_s1 }
   0x6   :  { %p146_p0 = scmp.ne.s32.totalorder %s110_s1, %s145_s25  ;;  %p151_p2 = scmp.lt.s32.totalorder %s145_s25, %s145_s25 }
   0x8   :  { %140 = vmatpush3.bf16.msra.mxu0 %v139_v7  ;;  %p152_p3 = por %p151_p2, %p150_p1 }
   0xa   :  { %p153_p4 = pnand %p152_p3, %p146_p0 }
   0xb   :  { %133 = vmatmul.mubr.msk.f32.vlgmr.msra.gmra.mrb[0].mxu0 %vm27_vm1, %v15_v8 }
  0xde   :  { %v97_v10 = vpop.f32.mrb[0].mxu0 }
  0xdf   :  { %v98_v11 = vadd.f32 %v117_v9, %v97_v10  ;;  %v134_v12 = vpop.f32.mrb[1].mxu0 }
  0xe1   :  { %102 = vst.msk [vmem:[#allocation2] sm:$0xff] %vm101_vm2, %v98_v11 }
  0xe2   :  { %156 = shalt.err (!%p153_p4)
}
  0xe3   :  { %s157_s27 = scalar_lea.hbm %s226_s3, 128 }
  0xe4   :  { %p158_p5 = scmp.ne.s32.totalorder %s226_s3, %s157_s27  ;;  %p161_p6 = scmp.lt.u32.totalorder %s157_s27, %s226_s3 }
  0xe6   :  { %p163_p7 = pnand %p161_p6, %p158_p5 }
  0xe8   :  { %166 = shalt.err (!%p163_p7)
}
  0xe9   :  { %112 = dma.vmem_to_hbm [thread:$0]  %s110_s1, 128, %s226_s3, [#allocation3]  }
  0xea   :  { %167 = dma.done.wait [#allocation3], 128  }
  0xeb   :  { %168 = vsyncadd [#allocation3], 4294967168 }
  0xec   :  { %116 = vsyncpa [#allocation3], 1 }

</bundles_post_ra>
